<compile_context>
chip_gen: v5e
topology: v5e:2x2
jax: 0.10.0
libtpu: 0.0.40
codegen_flags: <defaults>
</compile_context>

<pallas_src>
import functools

import jax
import jax.numpy as jnp
from jax.experimental import pallas as pl
from jax.experimental.pallas import tpu as pltpu


def _flash_mha_kernel(q_ref, k_ref, v_ref, wo_ref, bo_ref, o_ref,
                      m_sc, l_sc, acc_sc, *, n_heads, exp_dtype):
    ki = pl.program_id(2)

    @pl.when(ki == 0)
    def _init():
        m_sc[...] = jnp.full(m_sc.shape, -jnp.inf, dtype=m_sc.dtype)
        l_sc[...] = jnp.zeros(l_sc.shape, dtype=l_sc.dtype)
        acc_sc[...] = jnp.zeros(acc_sc.shape, dtype=acc_sc.dtype)

    q = q_ref[0]                       # (H, TQ, hd) bf16, pre-scaled by 1/sqrt(hd)
    k = k_ref[0]                       # (H, TK, hd) bf16
    v = v_ref[0]                       # (H, TK, hd) bf16

    # Batched-head scores: head_dim contraction happens inside the MXU (the
    # K "transpose" is the contraction); bf16 operands, f32 accumulation.
    s = jnp.einsum("hqd,hkd->hqk", q, k,
                   preferred_element_type=jnp.float32)        # (H, TQ, TK) f32

    # Online softmax update. Running stats stay f32; the exponentials may run
    # in bf16 on chips with a bf16 EUP (v6e/v7x) — p feeds a bf16 matmul anyway.
    m_prev = m_sc[...]
    m_new = jnp.maximum(m_prev, jnp.max(s, axis=-1, keepdims=True))
    alpha = jnp.exp(m_prev - m_new)                            # (H, TQ, 1) f32
    p = jnp.exp((s - m_new).astype(exp_dtype))                 # (H, TQ, TK)
    l_sc[...] = alpha * l_sc[...] + jnp.sum(
        p.astype(jnp.float32), axis=-1, keepdims=True)
    acc_sc[...] = alpha * acc_sc[...] + jnp.einsum(
        "hqk,hkd->hqd", p.astype(v.dtype), v,
        preferred_element_type=jnp.float32)
    m_sc[...] = m_new

    @pl.when(ki == pl.num_programs(2) - 1)
    def _finalize():
        # Normalize once per query tile with an EUP reciprocal (no VPU divide).
        inv_l = pl.reciprocal(l_sc[...], approx=True)          # (H, TQ, 1)
        ctx = (acc_sc[...] * inv_l).astype(wo_ref.dtype)       # (H, TQ, hd) bf16
        # Fused output projection with wo stored head-major (H, hd, D):
        #   out = sum_h ctx[h] @ wo[h]
        # -> no head re-interleave / transpose; output block stays lane-dense.
        out = jnp.dot(ctx[0], wo_ref[0], preferred_element_type=jnp.float32)
        for h in range(1, n_heads):
            out += jnp.dot(ctx[h], wo_ref[h], preferred_element_type=jnp.float32)
        o_ref[0] = (out + bo_ref[...]).astype(o_ref.dtype)


def _device_kind():
    try:
        return jax.devices()[0].device_kind.lower()
    except Exception:
        return ""


def autocorrelation_layer(x, params, n_heads, *, q_tile=None, kv_tile=None,
                          compute_dtype=jnp.bfloat16):
    """Forward pass of the simplified AutoCorrelationLayer (multi-head attention)."""
    B, T, D = x.shape
    assert D % n_heads == 0, "d_model must be divisible by n_heads"
    hd = D // n_heads

    kind = _device_kind()
    newer_gen = ("v6" in kind) or ("v7" in kind)

    # Generation-aware tile defaults: 256 fills the 2x256x256 MXUs on v6e/v7x,
    # 128 already saturates v5e's 4x128x128 MXU.
    base_tile = 256 if newer_gen else 128
    tq = min(T, base_tile) if q_tile is None else q_tile
    tk = min(T, base_tile) if kv_tile is None else kv_tile
    assert T % tq == 0 and T % tk == 0, "T must be divisible by the tile sizes"
    # NOTE: for non-toy shapes keep tq/tk multiples of 8 (sublane) and D a
    # multiple of 128 (lane) for fully dense loads/stores.

    exp_dtype = jnp.bfloat16 if newer_gen else jnp.float32    # bf16 EUP on v6e/v7x only

    cdt = compute_dtype
    xc = x.astype(cdt)

    # --- Q/K/V projections: ONCE, wrapper-side, head-major output layout. ---
    def proj(w, b):
        y = jnp.dot(xc, w.astype(cdt), preferred_element_type=jnp.float32)
        return y + b.reshape(1, 1, D).astype(jnp.float32)

    q = proj(params["wq"], params["bq"]) * (1.0 / hd ** 0.5)  # scale hoisted into Q
    k = proj(params["wk"], params["bk"])
    v = proj(params["wv"], params["bv"])

    def to_heads(t):                                          # (B,T,D) -> (B,H,T,hd)
        return t.reshape(B, T, n_heads, hd).transpose(0, 2, 1, 3).astype(cdt)

    qh, kh, vh = to_heads(q), to_heads(k), to_heads(v)

    # Output-projection weight in head-major row blocks: wo_hm[h] is (hd, D).
    wo_hm = params["wo"].reshape(n_heads, hd, D).astype(cdt)
    bo = params["bo"].reshape(1, D).astype(jnp.float32)

    kernel = functools.partial(_flash_mha_kernel, n_heads=n_heads,
                               exp_dtype=exp_dtype)

    # VMEM budget: actual block + scratch footprint (double-buffered blocks)
    # with 2x headroom, capped at 48 MiB so v7x's 64 MiB VMEM keeps slack.
    itm = jnp.dtype(cdt).itemsize
    vmem_est = (2 * n_heads * tq * hd * itm              # q block x2
                + 2 * 2 * n_heads * tk * hd * itm        # k, v blocks x2
                + 2 * D * D * itm                        # wo x2 (grid-invariant)
                + 2 * D * 4                              # bo x2
                + 2 * tq * D * x.dtype.itemsize          # out block x2
                + 2 * n_heads * tq * 4 * 2               # m, l scratch
                + n_heads * tq * hd * 4)                 # acc scratch
    vmem_limit = int(min(48 * 2 ** 20, max(32 * 2 ** 20, 2 * vmem_est)))

    # Advisory cost so XLA can overlap the wrapper projections with the kernel.
    cost = pl.CostEstimate(
        flops=4 * B * n_heads * T * T * hd + 2 * B * T * D * D,
        transcendentals=B * n_heads * T * T,
        bytes_accessed=(3 * B * T * D * itm + D * D * itm + D * 4
                        + B * T * D * x.dtype.itemsize))

    return pl.pallas_call(
        kernel,
        out_shape=jax.ShapeDtypeStruct((B, T, D), x.dtype),
        grid_spec=pltpu.PrefetchScalarGridSpec(
            num_scalar_prefetch=0,
            grid=(B, T // tq, T // tk),
            in_specs=[
                pl.BlockSpec((1, n_heads, tq, hd), lambda b, qi, ki: (b, 0, qi, 0)),  # Q
                pl.BlockSpec((1, n_heads, tk, hd), lambda b, qi, ki: (b, 0, ki, 0)),  # K
                pl.BlockSpec((1, n_heads, tk, hd), lambda b, qi, ki: (b, 0, ki, 0)),  # V
                pl.BlockSpec((n_heads, hd, D), lambda b, qi, ki: (0, 0, 0)),          # wo
                pl.BlockSpec((1, D), lambda b, qi, ki: (0, 0)),                       # bo
            ],
            out_specs=pl.BlockSpec((1, tq, D), lambda b, qi, ki: (b, qi, 0)),
            scratch_shapes=[
                pltpu.VMEM((n_heads, tq, 1), jnp.float32),   # running max
                pltpu.VMEM((n_heads, tq, 1), jnp.float32),   # running sum
                pltpu.VMEM((n_heads, tq, hd), jnp.float32),  # output accumulator
            ],
        ),
        compiler_params=pltpu.CompilerParams(
            dimension_semantics=("parallel", "parallel", "arbitrary"),
            vmem_limit_bytes=vmem_limit,
        ),
        cost_estimate=cost,
    )(qh, kh, vh, wo_hm, bo)


def reference(x, params, n_heads):
    """Pure-JAX (f32) reference of the intended forward pass."""
    B, T, D = x.shape
    hd = D // n_heads
    q = x @ params["wq"] + params["bq"]
    k = x @ params["wk"] + params["bk"]
    v = x @ params["wv"] + params["bv"]
    q = q.reshape(B, T, n_heads, hd).transpose(0, 2, 1, 3)
    k = k.reshape(B, T, n_heads, hd).transpose(0, 2, 1, 3)
    v = v.reshape(B, T, n_heads, hd).transpose(0, 2, 1, 3)
    s = jnp.einsum("bhtd,bhsd->bhts", q, k) / (hd ** 0.5)
    w = jax.nn.softmax(s, axis=-1)
    o = jnp.einsum("bhts,bhsd->bhtd", w, v)
    o = o.transpose(0, 2, 1, 3).reshape(B, T, D)
    return o @ params["wo"] + params["bo"]


def init_params(key, d_model):
    """Deterministic synthetic parameters. Weights stored as (D_in, D_out)."""
    keys = jax.random.split(key, 8)
    scale = 1.0 / (d_model ** 0.5)

    def w(k):
        return (scale * jax.random.normal(k, (d_model, d_model))).astype(jnp.float32)

    def b(k):
        return (0.01 * jax.random.normal(k, (1, d_model))).astype(jnp.float32)

    return {
        "wq": w(keys[0]), "bq": b(keys[1]),
        "wk": w(keys[2]), "bk": b(keys[3]),
        "wv": w(keys[4]), "bv": b(keys[5]),
        "wo": w(keys[6]), "bo": b(keys[7]),
    }


if __name__ == "__main__":
    B, T, D, n_heads = 2, 8, 32, 4

    key = jax.random.PRNGKey(0)
    k_x, k_p = jax.random.split(key)
    x = jax.random.normal(k_x, (B, T, D), dtype=jnp.float32)
    params = init_params(k_p, D)

    layer = jax.jit(functools.partial(autocorrelation_layer, n_heads=n_heads))
    out = jax.block_until_ready(layer(x, params))

    ref = jax.block_until_ready(reference(x, params, n_heads))
    assert out.shape == (B, T, D), out.shape
    # Kernel uses bf16 MXU operands (f32 accumulation), optionally bf16 exp,
    # and an EUP approx reciprocal -> compare at bf16-level tolerance.
    assert jnp.allclose(out, ref, atol=5e-2, rtol=5e-2), "mismatch vs JAX reference"

    print("KERNEL_OK")
</pallas_src>

<mosaic_0001>
module attributes {stable_mosaic.version = 11 : i64} {
  func.func @_flash_mha_kernel(%arg0: i32, %arg1: i32, %arg2: i32, %arg3: memref<1x4x8x8xbf16, #tpu.memory_space<vmem>>, %arg4: memref<1x4x8x8xbf16, #tpu.memory_space<vmem>>, %arg5: memref<1x4x8x8xbf16, #tpu.memory_space<vmem>>, %arg6: memref<4x8x32xbf16, #tpu.memory_space<vmem>>, %arg7: memref<1x32xf32, #tpu.memory_space<vmem>>, %arg8: memref<1x8x32xf32, #tpu.memory_space<vmem>>, %arg9: memref<4x8x1xf32, #tpu.memory_space<vmem>>, %arg10: memref<4x8x1xf32, #tpu.memory_space<vmem>>, %arg11: memref<4x8x8xf32, #tpu.memory_space<vmem>>) attributes {dimension_semantics = [#tpu.dimension_semantics<parallel>, #tpu.dimension_semantics<parallel>, #tpu.dimension_semantics<arbitrary>], iteration_bounds = array<i64: 2, 1, 1>, scalar_prefetch = 0 : i64, scratch_operands = 3 : i64, tpu.core_type = #tpu.core_type<tc>, window_params = [{transform_indices = @transform_0, window_bounds = array<i64: 1, 4, 8, 8>}, {transform_indices = @transform_1, window_bounds = array<i64: 1, 4, 8, 8>}, {transform_indices = @transform_2, window_bounds = array<i64: 1, 4, 8, 8>}, {pipeline_mode = #tpu.pipeline_mode<synchronous>, transform_indices = @transform_3, window_bounds = array<i64: 4, 8, 32>}, {pipeline_mode = #tpu.pipeline_mode<synchronous>, transform_indices = @transform_4, window_bounds = array<i64: 1, 32>}, {transform_indices = @transform_5, window_bounds = array<i64: 1, 8, 32>}]} {
    %c0_i32 = arith.constant 0 : i32
    %0 = arith.cmpi eq, %arg2, %c0_i32 : i32
    %1 = arith.extui %0 : i1 to i32
    %c0_i32_0 = arith.constant 0 : i32
    %2 = arith.cmpi ne, %1, %c0_i32_0 : i32
    scf.if %2 {
      %cst_35 = arith.constant 0xFF800000 : f32
      %36 = vector.broadcast %cst_35 : f32 to vector<4x8x1xf32>
      %c0_36 = arith.constant 0 : index
      %c0_37 = arith.constant 0 : index
      %c0_38 = arith.constant 0 : index
      %37 = vector.load %arg9[%c0_36, %c0_37, %c0_38] : memref<4x8x1xf32, #tpu.memory_space<vmem>>, vector<4x8x1xf32>
      tpu.vector_store %arg9[%c0_36, %c0_37, %c0_38], %36 {strides = array<i32>} : memref<4x8x1xf32, #tpu.memory_space<vmem>>, vector<4x8x1xf32>,
      %cst_39 = arith.constant 0.000000e+00 : f32
      %38 = vector.broadcast %cst_39 : f32 to vector<4x8x1xf32>
      %c0_40 = arith.constant 0 : index
      %c0_41 = arith.constant 0 : index
      %c0_42 = arith.constant 0 : index
      %39 = vector.load %arg10[%c0_40, %c0_41, %c0_42] : memref<4x8x1xf32, #tpu.memory_space<vmem>>, vector<4x8x1xf32>
      tpu.vector_store %arg10[%c0_40, %c0_41, %c0_42], %38 {strides = array<i32>} : memref<4x8x1xf32, #tpu.memory_space<vmem>>, vector<4x8x1xf32>,
      %cst_43 = arith.constant 0.000000e+00 : f32
      %40 = vector.broadcast %cst_43 : f32 to vector<4x8x8xf32>
      %c0_44 = arith.constant 0 : index
      %c0_45 = arith.constant 0 : index
      %c0_46 = arith.constant 0 : index
      %41 = vector.load %arg11[%c0_44, %c0_45, %c0_46] : memref<4x8x8xf32, #tpu.memory_space<vmem>>, vector<4x8x8xf32>
      tpu.vector_store %arg11[%c0_44, %c0_45, %c0_46], %40 {strides = array<i32>} : memref<4x8x8xf32, #tpu.memory_space<vmem>>, vector<4x8x8xf32>,
    } else {
    }
    %c0 = arith.constant 0 : index
    %c0_1 = arith.constant 0 : index
    %c0_2 = arith.constant 0 : index
    %c0_3 = arith.constant 0 : index
    %3 = vector.load %arg3[%c0, %c0_1, %c0_2, %c0_3] : memref<1x4x8x8xbf16, #tpu.memory_space<vmem>>, vector<1x4x8x8xbf16>
    %4 = vector.shape_cast %3 : vector<1x4x8x8xbf16> to vector<4x8x8xbf16>
    %c0_4 = arith.constant 0 : index
    %c0_5 = arith.constant 0 : index
    %c0_6 = arith.constant 0 : index
    %c0_7 = arith.constant 0 : index
    %5 = vector.load %arg4[%c0_4, %c0_5, %c0_6, %c0_7] : memref<1x4x8x8xbf16, #tpu.memory_space<vmem>>, vector<1x4x8x8xbf16>
    %6 = vector.shape_cast %5 : vector<1x4x8x8xbf16> to vector<4x8x8xbf16>
    %c0_8 = arith.constant 0 : index
    %c0_9 = arith.constant 0 : index
    %c0_10 = arith.constant 0 : index
    %c0_11 = arith.constant 0 : index
    %7 = vector.load %arg5[%c0_8, %c0_9, %c0_10, %c0_11] : memref<1x4x8x8xbf16, #tpu.memory_space<vmem>>, vector<1x4x8x8xbf16>
    %8 = vector.shape_cast %7 : vector<1x4x8x8xbf16> to vector<4x8x8xbf16>
    "tpu.trace_start"() <{level = 10 : i32, message = "hqd,hkd->hqk"}> : () -> ()
    %cst = arith.constant dense<0.000000e+00> : vector<4x8x8xf32>
    %9 = tpu.matmul %4, %6, %cst {dimension_numbers = #tpu.dot_dimension_numbers<[2], [2], [1], [1], [0, 0, 0, 1, 1, 1], [0], [0]>} : vector<4x8x8xbf16>, vector<4x8x8xbf16>, vector<4x8x8xf32> -> vector<4x8x8xf32>
    "tpu.trace_stop"() : () -> ()
    %c0_12 = arith.constant 0 : index
    %c0_13 = arith.constant 0 : index
    %c0_14 = arith.constant 0 : index
    %10 = vector.load %arg9[%c0_12, %c0_13, %c0_14] : memref<4x8x1xf32, #tpu.memory_space<vmem>>, vector<4x8x1xf32>
    %cst_15 = arith.constant dense<0xFF800000> : vector<4x8xf32>
    %11 = vector.multi_reduction <maximumf>, %9, %cst_15 [2] : vector<4x8x8xf32> to vector<4x8xf32>
    %12 = vector.shape_cast %11 : vector<4x8xf32> to vector<4x8x1xf32>
    %13 = arith.maximumf %10, %12 : vector<4x8x1xf32>
    %14 = arith.subf %10, %13 : vector<4x8x1xf32>
    %15 = math.exp %14 : vector<4x8x1xf32>
    %16 = vector.broadcast %13 : vector<4x8x1xf32> to vector<4x8x8xf32>
    %17 = arith.subf %9, %16 : vector<4x8x8xf32>
    %18 = math.exp %17 : vector<4x8x8xf32>
    %c0_16 = arith.constant 0 : index
    %c0_17 = arith.constant 0 : index
    %c0_18 = arith.constant 0 : index
    %19 = vector.load %arg10[%c0_16, %c0_17, %c0_18] : memref<4x8x1xf32, #tpu.memory_space<vmem>>, vector<4x8x1xf32>
    %20 = arith.mulf %15, %19 : vector<4x8x1xf32>
    %cst_19 = arith.constant dense<0.000000e+00> : vector<4x8xf32>
    %21 = vector.multi_reduction <add>, %18, %cst_19 [2] : vector<4x8x8xf32> to vector<4x8xf32>
    %22 = vector.shape_cast %21 : vector<4x8xf32> to vector<4x8x1xf32>
    %23 = arith.addf %20, %22 : vector<4x8x1xf32>
    %c0_20 = arith.constant 0 : index
    %c0_21 = arith.constant 0 : index
    %c0_22 = arith.constant 0 : index
    %24 = vector.load %arg10[%c0_20, %c0_21, %c0_22] : memref<4x8x1xf32, #tpu.memory_space<vmem>>, vector<4x8x1xf32>
    tpu.vector_store %arg10[%c0_20, %c0_21, %c0_22], %23 {strides = array<i32>} : memref<4x8x1xf32, #tpu.memory_space<vmem>>, vector<4x8x1xf32>,
    %c0_23 = arith.constant 0 : index
    %c0_24 = arith.constant 0 : index
    %c0_25 = arith.constant 0 : index
    %25 = vector.load %arg11[%c0_23, %c0_24, %c0_25] : memref<4x8x8xf32, #tpu.memory_space<vmem>>, vector<4x8x8xf32>
    %26 = vector.broadcast %15 : vector<4x8x1xf32> to vector<4x8x8xf32>
    %27 = arith.mulf %26, %25 : vector<4x8x8xf32>
    %28 = arith.truncf %18 : vector<4x8x8xf32> to vector<4x8x8xbf16>
    "tpu.trace_start"() <{level = 10 : i32, message = "hqk,hkd->hqd"}> : () -> ()
    %cst_26 = arith.constant dense<0.000000e+00> : vector<4x8x8xf32>
    %29 = tpu.matmul %28, %8, %cst_26 {dimension_numbers = #tpu.dot_dimension_numbers<[2], [1], [1], [2], [0, 0, 0, 1, 1, 2], [0], [0]>} : vector<4x8x8xbf16>, vector<4x8x8xbf16>, vector<4x8x8xf32> -> vector<4x8x8xf32>
    "tpu.trace_stop"() : () -> ()
    %30 = arith.addf %27, %29 : vector<4x8x8xf32>
    %c0_27 = arith.constant 0 : index
    %c0_28 = arith.constant 0 : index
    %c0_29 = arith.constant 0 : index
    %31 = vector.load %arg11[%c0_27, %c0_28, %c0_29] : memref<4x8x8xf32, #tpu.memory_space<vmem>>, vector<4x8x8xf32>
    tpu.vector_store %arg11[%c0_27, %c0_28, %c0_29], %30 {strides = array<i32>} : memref<4x8x8xf32, #tpu.memory_space<vmem>>, vector<4x8x8xf32>,
    %c0_30 = arith.constant 0 : index
    %c0_31 = arith.constant 0 : index
    %c0_32 = arith.constant 0 : index
    %32 = vector.load %arg9[%c0_30, %c0_31, %c0_32] : memref<4x8x1xf32, #tpu.memory_space<vmem>>, vector<4x8x1xf32>
    tpu.vector_store %arg9[%c0_30, %c0_31, %c0_32], %13 {strides = array<i32>} : memref<4x8x1xf32, #tpu.memory_space<vmem>>, vector<4x8x1xf32>,
    %c0_i32_33 = arith.constant 0 : i32
    %33 = arith.cmpi eq, %arg2, %c0_i32_33 : i32
    %34 = arith.extui %33 : i1 to i32
    %c0_i32_34 = arith.constant 0 : i32
    %35 = arith.cmpi ne, %34, %c0_i32_34 : i32
    scf.if %35 {
      %c0_35 = arith.constant 0 : index
      %c0_36 = arith.constant 0 : index
      %c0_37 = arith.constant 0 : index
      %36 = vector.load %arg10[%c0_35, %c0_36, %c0_37] : memref<4x8x1xf32, #tpu.memory_space<vmem>>, vector<4x8x1xf32>
      %37 = tpu.reciprocal %36 {approx = true} : vector<4x8x1xf32> -> vector<4x8x1xf32>
      %c0_38 = arith.constant 0 : index
      %c0_39 = arith.constant 0 : index
      %c0_40 = arith.constant 0 : index
      %38 = vector.load %arg11[%c0_38, %c0_39, %c0_40] : memref<4x8x8xf32, #tpu.memory_space<vmem>>, vector<4x8x8xf32>
      %39 = vector.broadcast %37 : vector<4x8x1xf32> to vector<4x8x8xf32>
      %40 = arith.mulf %38, %39 : vector<4x8x8xf32>
      %41 = arith.truncf %40 : vector<4x8x8xf32> to vector<4x8x8xbf16>
      %42 = vector.extract_strided_slice %41 {offsets = [0, 0, 0], sizes = [1, 8, 8], strides = [1, 1, 1]} : vector<4x8x8xbf16> to vector<1x8x8xbf16>
      %43 = vector.shape_cast %42 : vector<1x8x8xbf16> to vector<8x8xbf16>
      %c0_41 = arith.constant 0 : index
      %c0_42 = arith.constant 0 : index
      %c0_43 = arith.constant 0 : index
      %44 = vector.load %arg6[%c0_41, %c0_42, %c0_43] : memref<4x8x32xbf16, #tpu.memory_space<vmem>>, vector<1x8x32xbf16>
      %45 = vector.shape_cast %44 : vector<1x8x32xbf16> to vector<8x32xbf16>
      %cst_44 = arith.constant dense<0.000000e+00> : vector<8x32xf32>
      %46 = tpu.matmul %43, %45, %cst_44 {dimension_numbers = #tpu.dot_dimension_numbers<[1], [0], [0], [1], [0, 0, 1, 1], [], []>} : vector<8x8xbf16>, vector<8x32xbf16>, vector<8x32xf32> -> vector<8x32xf32>
      %47 = vector.extract_strided_slice %41 {offsets = [1, 0, 0], sizes = [1, 8, 8], strides = [1, 1, 1]} : vector<4x8x8xbf16> to vector<1x8x8xbf16>
      %48 = vector.shape_cast %47 : vector<1x8x8xbf16> to vector<8x8xbf16>
      %c1 = arith.constant 1 : index
      %c0_45 = arith.constant 0 : index
      %c0_46 = arith.constant 0 : index
      %49 = vector.load %arg6[%c1, %c0_45, %c0_46] : memref<4x8x32xbf16, #tpu.memory_space<vmem>>, vector<1x8x32xbf16>
      %50 = vector.shape_cast %49 : vector<1x8x32xbf16> to vector<8x32xbf16>
      %cst_47 = arith.constant dense<0.000000e+00> : vector<8x32xf32>
      %51 = tpu.matmul %48, %50, %cst_47 {dimension_numbers = #tpu.dot_dimension_numbers<[1], [0], [0], [1], [0, 0, 1, 1], [], []>} : vector<8x8xbf16>, vector<8x32xbf16>, vector<8x32xf32> -> vector<8x32xf32>
      %52 = arith.addf %46, %51 : vector<8x32xf32>
      %53 = vector.extract_strided_slice %41 {offsets = [2, 0, 0], sizes = [1, 8, 8], strides = [1, 1, 1]} : vector<4x8x8xbf16> to vector<1x8x8xbf16>
      %54 = vector.shape_cast %53 : vector<1x8x8xbf16> to vector<8x8xbf16>
      %c2 = arith.constant 2 : index
      %c0_48 = arith.constant 0 : index
      %c0_49 = arith.constant 0 : index
      %55 = vector.load %arg6[%c2, %c0_48, %c0_49] : memref<4x8x32xbf16, #tpu.memory_space<vmem>>, vector<1x8x32xbf16>
      %56 = vector.shape_cast %55 : vector<1x8x32xbf16> to vector<8x32xbf16>
      %cst_50 = arith.constant dense<0.000000e+00> : vector<8x32xf32>
      %57 = tpu.matmul %54, %56, %cst_50 {dimension_numbers = #tpu.dot_dimension_numbers<[1], [0], [0], [1], [0, 0, 1, 1], [], []>} : vector<8x8xbf16>, vector<8x32xbf16>, vector<8x32xf32> -> vector<8x32xf32>
      %58 = arith.addf %52, %57 : vector<8x32xf32>
      %59 = vector.extract_strided_slice %41 {offsets = [3, 0, 0], sizes = [1, 8, 8], strides = [1, 1, 1]} : vector<4x8x8xbf16> to vector<1x8x8xbf16>
      %60 = vector.shape_cast %59 : vector<1x8x8xbf16> to vector<8x8xbf16>
      %c3 = arith.constant 3 : index
      %c0_51 = arith.constant 0 : index
      %c0_52 = arith.constant 0 : index
      %61 = vector.load %arg6[%c3, %c0_51, %c0_52] : memref<4x8x32xbf16, #tpu.memory_space<vmem>>, vector<1x8x32xbf16>
      %62 = vector.shape_cast %61 : vector<1x8x32xbf16> to vector<8x32xbf16>
      %cst_53 = arith.constant dense<0.000000e+00> : vector<8x32xf32>
      %63 = tpu.matmul %60, %62, %cst_53 {dimension_numbers = #tpu.dot_dimension_numbers<[1], [0], [0], [1], [0, 0, 1, 1], [], []>} : vector<8x8xbf16>, vector<8x32xbf16>, vector<8x32xf32> -> vector<8x32xf32>
      %64 = arith.addf %58, %63 : vector<8x32xf32>
      %c0_54 = arith.constant 0 : index
      %c0_55 = arith.constant 0 : index
      %65 = vector.load %arg7[%c0_54, %c0_55] : memref<1x32xf32, #tpu.memory_space<vmem>>, vector<1x32xf32>
      %66 = vector.broadcast %65 : vector<1x32xf32> to vector<8x32xf32>
      %67 = arith.addf %64, %66 : vector<8x32xf32>
      %c0_56 = arith.constant 0 : index
      %c0_57 = arith.constant 0 : index
      %c0_58 = arith.constant 0 : index
      %68 = vector.load %arg8[%c0_56, %c0_57, %c0_58] : memref<1x8x32xf32, #tpu.memory_space<vmem>>, vector<1x8x32xf32>
      %69 = vector.shape_cast %68 : vector<1x8x32xf32> to vector<8x32xf32>
      %70 = vector.shape_cast %67 : vector<8x32xf32> to vector<1x8x32xf32>
      tpu.vector_store %arg8[%c0_56, %c0_57, %c0_58], %70 {strides = array<i32>} : memref<1x8x32xf32, #tpu.memory_space<vmem>>, vector<1x8x32xf32>,
    } else {
    }
    return
  }
  func.func @transform_0(%arg0: i32, %arg1: i32, %arg2: i32) -> (i32, i32, i32, i32) {
    %c0_i32 = arith.constant 0 : i32
    %c0_i32_0 = arith.constant 0 : i32
    %c0_i32_1 = arith.constant 0 : i32
    return %arg0, %c0_i32, %arg1, %c0_i32_0 : i32, i32, i32, i32
  }
  func.func @transform_1(%arg0: i32, %arg1: i32, %arg2: i32) -> (i32, i32, i32, i32) {
    %c0_i32 = arith.constant 0 : i32
    %c0_i32_0 = arith.constant 0 : i32
    %c0_i32_1 = arith.constant 0 : i32
    return %arg0, %c0_i32, %arg2, %c0_i32_0 : i32, i32, i32, i32
  }
  func.func @transform_2(%arg0: i32, %arg1: i32, %arg2: i32) -> (i32, i32, i32, i32) {
    %c0_i32 = arith.constant 0 : i32
    %c0_i32_0 = arith.constant 0 : i32
    %c0_i32_1 = arith.constant 0 : i32
    return %arg0, %c0_i32, %arg2, %c0_i32_0 : i32, i32, i32, i32
  }
  func.func @transform_3(%arg0: i32, %arg1: i32, %arg2: i32) -> (i32, i32, i32) {
    %c0_i32 = arith.constant 0 : i32
    %c0_i32_0 = arith.constant 0 : i32
    %c0_i32_1 = arith.constant 0 : i32
    %c0_i32_2 = arith.constant 0 : i32
    return %c0_i32, %c0_i32_0, %c0_i32_1 : i32, i32, i32
  }
  func.func @transform_4(%arg0: i32, %arg1: i32, %arg2: i32) -> (i32, i32) {
    %c0_i32 = arith.constant 0 : i32
    %c0_i32_0 = arith.constant 0 : i32
    %c0_i32_1 = arith.constant 0 : i32
    return %c0_i32, %c0_i32_0 : i32, i32
  }
  func.func @transform_5(%arg0: i32, %arg1: i32, %arg2: i32) -> (i32, i32, i32) {
    %c0_i32 = arith.constant 0 : i32
    %c0_i32_0 = arith.constant 0 : i32
    return %arg0, %arg1, %c0_i32 : i32, i32, i32
  }
}

</mosaic_0001>

<bundles_post_ra>
// kernel: autocorrelation_layer.1
= control target key start
LH: loop header
LB: loop body
LE: loop exit
PB: predicated region body
PF: predicated region fallthrough
CT: control target
= control target key end

     0   :  { %10 = vsyncpa [#allocation6], 0  ;;  %s1368_s0 = inlined_call_operand.vmem [shape: bf16[2,4,8,8], index: 0, kind: input, shape index: {}]   ;;  %s1369_s1 = inlined_call_operand.vmem [shape: bf16[2,4,8,8], index: 1, kind: input, shape index: {}]   ;;  %s1370_s2 = inlined_call_operand.vmem [shape: bf16[2,4,8,8], index: 2, kind: input, shape index: {}]   ;;  %s1371_s3 = inlined_call_operand.vmem [shape: bf16[4,8,32], index: 3, kind: input, shape index: {}]   ;;  %s1372_s4 = inlined_call_operand.vmem [shape: f32[1,32], index: 4, kind: input, shape index: {}]   ;;  %s1373_s5 = inlined_call_operand.hbm [shape: f32[2,8,32], index: 5, kind: output, shape index: {}]  }
   0x1   :  { %12 = vsyncpa [#allocation6 + $0x1], 0  ;;  %s1137_s18 = smov 0   ;;  %s1139_s19 = smov 0  }
   0x2   :  { %s1141_s20 = smov 0   ;;  %s1143_s21 = smov 0  }
   0x3   :  { %s1145_s22 = smov 0   ;;  %s1147_s23 = smov 0  }
   0x4 LB: > { %s904_s24 = sadd.s32 4294967295, %s1102_s23   ;;  %s905_s25 = sadd.s32 4294967294, %s1102_s23   ;;  %s1102_s23 = sphi %s1147_s23, %s18_s23   ;;  %s1098_s22 = sphi %s1145_s22, %s1380_s22   ;;  %s1094_s21 = sphi %s1143_s21, %s1379_s21   ;;  %s1090_s20 = sphi %s1141_s20, %s1378_s20   ;;  %s1086_s19 = sphi %s1139_s19, %s1377_s19   ;;  %s1082_s18 = sphi %s1137_s18, %s1376_s18  }
   0x5   : > { %s37_s26 = sadd.s32 1, %s1098_s22  ;;  %s172_s27 = sadd.s32 1, %s1090_s20 }
   0x6   : > { %p39_p0 = scmp.ge.s32.totalorder %s37_s26, 2  ;;  %p182_p1 = scmp.ne.s32.totalorder %s1090_s20, %s1086_s19 }
   0x7   : > { %p183_p2 = scmp.eq.s32.totalorder %s904_s24, 1  ;;  %p188_p3 = scmp.ne.s32.totalorder %s1086_s19, %s1082_s18 }
   0x8   : > { %s1382_s26 = smov (%p39_p0, %s37_s26), 0  ;;  %p189_p5 = scmp.eq.s32.totalorder %s905_s25, 1 }
   0x9   : > { %p1177_p4 = por %p183_p2, %p182_p1  ;;  %s167_s29 = ssub.s32 %s1098_s22, %s1382_s26 }
   0xa   : > { %p908_p6 = scmp.ge.s32.totalorder %s1102_s23, 1  ;;  %p170_p7 = scmp.eq.s32.totalorder %s167_s29, 0 }
   0xb   : > { %p1184_p8 = por %p189_p5, %p188_p3  ;;  %p246_p9 = scmp.lt.s32.totalorder %s1102_s23, 3 }
   0xc   : > { %s1190_s6 = scalar_select %p170_p7, %s1090_s20, %s172_s27  }
   0xd   : > { %p247_p10 = pnand %p908_p6, %p246_p9 }
   0xe   : > { %p293_p11 = scmp.lt.s32.totalorder (!%p247_p10), %s1094_s21, 1  ;;  %s932_s13 = sshll.u32 (!%p247_p10), %s1094_s21, 3 }
   0xf   : > { %250 = sbr.rel (%p247_p10) target bundleno = 794 (0x31a), region = 40  ;;  %s786_s16 = scalar_lea.hbm (!%p247_p10), %s1373_s5, %s932_s13 }
  0x10   : > { %s790_s29 = sshll.u32 (!%p247_p10), %s786_s16, 4  ;;  %s791_s29 = int_to_ptr.hbm [resolvable:$true] %s790_s29 }
  0x14   : > { %s294_s7 = scalar_select %p293_p11, %s1094_s21, 1  ;;  %vm331_vm0 = vcmask 64512   ;;  %vm322_vm1 = vcmask 7168   ;;  %v1104_v12 = vmov -inf   ;;  %v1105_v25 = vmov 0  }
  0x15   : > { %323 = vst.msk [vmem:[#allocation2] sm:$0xff] %vm322_vm1, %v1104_v12  ;;  %997 = vset.pattern.permute.xlu0 %v1105_v25  ;;  %996 = vset.pattern.permute.xlu2 %v1105_v25  ;;  %v1106_v26 = vmov 0.0   ;;  %vm553_vm2 = vcmask 1043456   ;;  %vm772_vm3 = vcmask 261120  }
  0x16   : > { %s1194_s8 = sshll.u32 %s294_s7, 4  ;;  %324 = vst.msk [vmem:[#allocation2 + $0x8] sm:$0xff] %vm322_vm1, %v1104_v12  ;;  %998 = vset.pattern.permute.xlu1 %v1105_v25  ;;  %s1038_s7 = sshra.s32 %s791_s29, 4  ;;  %s1039_s7 = int_to_ptr.hbm [resolvable:$true] %s1038_s7 }
  0x17   : > { %s308_s11 = scalar_lea.vmem %s1369_s1, %s1194_s8  ;;  %s300_s14 = scalar_lea.vmem %s1368_s0, %s1194_s8  ;;  %325 = vst.msk [vmem:[#allocation2 + $0x10] sm:$0xff] %vm322_vm1, %v1104_v12 }
  0x18   : > { %v340_v0 = vld [vmem:[%s308_s11] sm:$0xf]  ;;  %v342_v1 = vld [vmem:[%s308_s11 + $0x8] sm:$0xf]  ;;  %v341_v4 = vld [vmem:[%s308_s11 + $0x4] sm:$0xf]  ;;  %s316_s17 = scalar_lea.vmem %s1370_s2, %s1194_s8  ;;  %p1045_p1 = scmp.lt.s32.totalorder %s1039_s7, %s1373_s5 }
  0x19   : > { %v353_v2 = vsel %vm331_vm0, %v340_v0, 0  ;;  %v391_v3 = vsel %vm331_vm0, %v342_v1, 0  ;;  %v372_v5 = vsel %vm331_vm0, %v341_v4, 0  ;;  %v343_v6 = vld [vmem:[%s308_s11 + $0xc] sm:$0xf]  ;;  %326 = vst.msk [vmem:[#allocation2 + $0x18] sm:$0xff] %vm322_vm1, %v1104_v12 }
  0x1a   : > { %362 = vmatpush.bf16.xpose.msra.mxu0 %v353_v2  ;;  %400 = vmatpush.bf16.xpose.msra.mxu2 %v391_v3  ;;  %v410_v7 = vsel %vm331_vm0, %v343_v6, 0  ;;  %v336_v8 = vld [vmem:[%s300_s14] sm:$0xf]  ;;  %v338_v9 = vld [vmem:[%s300_s14 + $0x8] sm:$0xf]  ;;  %329 = vst.msk [vmem:[#allocation3 + $0x10] sm:$0xff] %vm322_vm1, %v1106_v26 }
  0x1b   : > { %381 = vmatpush.bf16.xpose.msra.mxu1 %v372_v5  ;;  %419 = vmatpush.bf16.xpose.msra.mxu3 %v410_v7  ;;  %v337_v10 = vld [vmem:[%s300_s14 + $0x4] sm:$0xf]  ;;  %v339_v11 = vld [vmem:[%s300_s14 + $0xc] sm:$0xf]  ;;  %327 = vst.msk [vmem:[#allocation3] sm:$0xff] %vm322_vm1, %v1106_v26  ;;  %s290_s11 = sand.u32 1, %s1086_s19  }
  0x1c   : > { %328 = vst.msk [vmem:[#allocation3 + $0x8] sm:$0xff] %vm322_vm1, %v1106_v26  ;;  %v1240_v27 = vld [vmem:[#allocation2] sm:$0xff]  ;;  %v346_v43 = vld [vmem:[%s316_s17 + $0x8] sm:$0xf]  ;;  %v347_v45 = vld [vmem:[%s316_s17 + $0xc] sm:$0xf] }
  0x1d   : > { %330 = vst.msk [vmem:[#allocation3 + $0x18] sm:$0xff] %vm322_vm1, %v1106_v26  ;;  %v1252_v33 = vld [vmem:[#allocation2 + $0x8] sm:$0xff]  ;;  %v593_v44 = vsel %vm553_vm2, %v346_v43, 0  ;;  %v612_v46 = vsel %vm553_vm2, %v347_v45, 0  ;;  %v344_v47 = vld [vmem:[%s316_s17] sm:$0xf] }
  0x1e   : > { %332 = vst.msk [vmem:[#allocation4] sm:$0xff] %vm331_vm0, %v1106_v26  ;;  %v1250_v31 = vld [vmem:[#allocation2 + $0x10] sm:$0xff]  ;;  %v555_v48 = vsel %vm553_vm2, %v344_v47, 0  ;;  %v345_v50 = vld [vmem:[%s316_s17 + $0x4] sm:$0xf]  ;;  %s909_s12 = sshll.u32 %s290_s11, 3 }
  0x1f   : > { %333 = vst.msk [vmem:[#allocation4 + $0x8] sm:$0xff] %vm331_vm0, %v1106_v26  ;;  %v574_v52 = vsel %vm553_vm2, %v345_v50, 0  ;;  %s292_s25 = scalar_lea.vmem [#allocation5], %s909_s12  ;;  %s775_s21 = scalar_lea.sflag [#allocation6], %s290_s11 }
  0x20   : > { %334 = vst.msk [vmem:[#allocation4 + $0x10] sm:$0xff] %vm331_vm0, %v1106_v26  ;;  %v428_v39 = vld [vmem:[#allocation2 + $0x18] sm:$0xff]  ;;  %s788_s27 = sshll.u32 %s292_s25, 4  ;;  %s1040_s8 = scalar_lea.hbm %s1039_s7, 8  ;;  %s789_s27 = int_to_ptr.vmem [resolvable:$true] %s788_s27 }
  0x21   : > { %916 = vmatmul.msk.bf16.vlgmr.msra.gmra.mxu0 %vm331_vm0, %v336_v8  ;;  %918 = vmatmul.msk.bf16.vlgmr.msra.gmra.mxu2 %vm331_vm0, %v338_v9  ;;  %335 = vst.msk [vmem:[#allocation4 + $0x18] sm:$0xff] %vm331_vm0, %v1106_v26  ;;  %p1041_p12 = scmp.ne.s32.totalorder %s1039_s7, %s1040_s8  ;;  %s1044_s12 = scalar_lea.hbm %s1373_s5, 16 }
  0x22   : > { %917 = vmatmul.msk.bf16.vlgmr.msra.gmra.mxu1 %vm331_vm0, %v337_v10  ;;  %919 = vmatmul.msk.bf16.vlgmr.msra.gmra.mxu3 %vm331_vm0, %v339_v11  ;;  %p1046_p2 = scmp.lt.s32.totalorder %s1044_s12, %s1040_s8 }
  0x23   : > { %602 = vmatpush.bf16.msrb.mxu2 %v593_v44  ;;  %621 = vmatpush.bf16.msrb.mxu3 %v612_v46  ;;  %p1042_p13 = pnand %p1041_p12, %p1177_p4 }
  0x24   : > { %564 = vmatpush.bf16.msrb.mxu0 %v555_v48  ;;  %583 = vmatpush.bf16.msrb.mxu1 %v574_v52  ;;  %p1047_p3 = por %p1046_p2, %p1045_p1 }
  0x25   : > { %p1043_p0 = pneg %p1042_p13 }
  0x27   : > { %v520_v46 = vld [vmem:[#allocation4 + $0x10] sm:$0xff]  ;;  %p1048_p5 = pnand %p1047_p3, %p1043_p0 }
  0x28   : > { %v521_v44 = vld [vmem:[#allocation4 + $0x18] sm:$0xff] }
  0x9e   : > { %v1216_v13 = vpop.f32.mrf.mxu0 }
  0x9f   : > { %v429_v14 = vsel %vm331_vm0, %v1216_v13, -inf  ;;  %v1220_v15 = vpop.f32.mrf.mxu1 }
  0xa0   : > { %430 = vmax.xlane.f32.xlu1 %v429_v14  ;;  %v432_v18 = vsel %vm331_vm0, %v1220_v15, -inf }
  0xa4   : > { %v1222_v16 = vpop.f32.mrf.mxu2 }
  0xa5   : > { %v435_v17 = vsel %vm331_vm0, %v1222_v16, -inf  ;;  %v1228_v20 = vpop.f32.mrf.mxu3 }
  0xa6   : > { %436 = vmax.xlane.f32.xlu0 %v435_v17  ;;  %v366_v19 = vpop.f32.mrf.mxu0  ;;  %v438_v22 = vsel %vm331_vm0, %v1228_v20, -inf }
  0xa7   : > { %v385_v21 = vpop.f32.mrf.mxu1  ;;  %v491_v19 = vld [vmem:[#allocation3 + $0x10] sm:$0xff] }
  0xa8   : > { %433 = vmax.xlane.f32.xlu1 %v432_v18 }
  0xac   : > { %v404_v23 = vpop.f32.mrf.mxu2 }
  0xad   : > { %v423_v24 = vpop.f32.mrf.mxu3  ;;  %v492_v23 = vld [vmem:[#allocation3 + $0x18] sm:$0xff] }
  0xae   : > { %439 = vmax.xlane.f32.xlu0 %v438_v22 }
 0x113   : > { %v431_v28 = vpop.xlane.xlu1 %430 }
 0x114   : > { %v1243_v29 = vmax.f32 %v1240_v27, %v431_v28  ;;  %v489_v28 = vld [vmem:[#allocation3] sm:$0xff] }
 0x116   : > { %v445_v30 = vsub.f32 %v1240_v27, %v1243_v29  ;;  %635 = vst.msk [vmem:[#allocation2] sm:$0xff] %vm322_vm1, %v1243_v29  ;;  %459 = vperm.xlu0 %997, %v1243_v29  }
 0x118   : > { %v449_v14 = vmul.f32 1.442695, %v445_v30 }
 0x119   : > { %v437_v32 = vpop.xlane.xlu0 %436 }
 0x11a   : > { %v1255_v34 = vmax.f32 %v1250_v31, %v437_v32 }
 0x11b   : > { %v434_v35 = vpop.xlane.xlu1 %433 }
 0x11c   : > { %v447_v36 = vsub.f32 %v1250_v31, %v1255_v34  ;;  %637 = vst.msk [vmem:[#allocation2 + $0x10] sm:$0xff] %vm322_vm1, %v1255_v34  ;;  %v1262_v37 = vmax.f32 %v1252_v33, %v434_v35  ;;  %469 = vperm.xlu2 %996, %v1255_v34   ;;  %v490_v35 = vld [vmem:[#allocation3 + $0x8] sm:$0xff] }
 0x11e   : > { %v446_v38 = vsub.f32 %v1252_v33, %v1262_v37  ;;  %636 = vst.msk [vmem:[#allocation2 + $0x8] sm:$0xff] %vm322_vm1, %v1262_v37  ;;  %464 = vperm.xlu1 %998, %v1262_v37  }
 0x121   : > { %v440_v40 = vpop.xlane.xlu0 %439 }
 0x122   : > { %v444_v41 = vmax.f32 %v428_v39, %v440_v40 }
 0x124   : > { %v448_v42 = vsub.f32 %v428_v39, %v444_v41  ;;  %638 = vst.msk [vmem:[#allocation2 + $0x18] sm:$0xff] %vm322_vm1, %v444_v41  ;;  %474 = vperm.xlu2 %996, %v444_v41  }
 0x126   : > { %v455_v8 = vmul.f32 1.442695, %v448_v42 }
 0x176   : > { %v470_v49 = vpop.permute.xlu2 %469 }
 0x177   : > { %v479_v51 = vsub.f32 %v1222_v16, %v470_v49  ;;  %v451_v16 = vmul.f32 1.442695, %v446_v38 }
 0x179   : > { %v485_v53 = vmul.f32 1.442695, %v479_v51 }
 0x17b   : > { %1000 = vpow2.f32 %v485_v53 }
 0x17e   : > { %v475_v54 = vpop.permute.xlu2 %474 }
 0x17f   : > { %v480_v55 = vsub.f32 %v1228_v20, %v475_v54 }
 0x181   : > { %v1001_v56 = vpop.eup %1000  ;;  %v487_v57 = vmul.f32 1.442695, %v480_v55 }
 0x182   : > { %v503_v58 = vsel %vm331_vm0, %v1001_v56, 0.0  ;;  %v548_v59 = vpack.c.bf16 %v1001_v56, %v1001_v56 }
 0x183   : > { %1002 = vpow2.f32 %v487_v57  ;;  %504 = vadd.xlane.f32.xlu2 %v503_v58  ;;  %v518_v57 = vld [vmem:[#allocation4] sm:$0xff] }
 0x184   : > { %922 = vmatmul.msk.bf16.vlgmr.msrb.gmra.mxu2 %vm331_vm0, %v548_v59 }
 0x188   : > { %v460_v60 = vpop.permute.xlu0 %459 }
 0x189   : > { %v1003_v61 = vpop.eup %1002  ;;  %v477_v62 = vsub.f32 %v1216_v13, %v460_v60  ;;  %v453_v13 = vmul.f32 1.442695, %v447_v36 }
 0x18a   : > { %v506_v63 = vsel %vm331_vm0, %v1003_v61, 0.0  ;;  %v549_v0 = vpack.c.bf16 %v1003_v61, %v1003_v61 }
 0x18b   : > { %v481_v1 = vmul.f32 1.442695, %v477_v62  ;;  %507 = vadd.xlane.f32.xlu1 %v506_v63  ;;  %v519_v63 = vld [vmem:[#allocation4 + $0x8] sm:$0xff] }
 0x18c   : > { %923 = vmatmul.msk.bf16.vlgmr.msrb.gmra.mxu3 %vm331_vm0, %v549_v0 }
 0x18d   : > { %1004 = vpow2.f32 %v481_v1 }
 0x190   : > { %v465_v2 = vpop.permute.xlu1 %464 }
 0x191   : > { %v478_v3 = vsub.f32 %v1220_v15, %v465_v2 }
 0x193   : > { %v1005_v4 = vpop.eup %1004  ;;  %v483_v5 = vmul.f32 1.442695, %v478_v3  ;;  %v929_v3 = vld [vmem:[%s1371_s3 + $0xc] sm:$0xf] }
 0x194   : > { %v497_v6 = vsel %vm331_vm0, %v1005_v4, 0.0  ;;  %v546_v7 = vpack.c.bf16 %v1005_v4, %v1005_v4  ;;  %v751_v4 = vsel %vm553_vm2, %v929_v3, 0 }
 0x195   : > { %1006 = vpow2.f32 %v483_v5  ;;  %498 = vadd.xlane.f32.xlu0 %v497_v6  ;;  %760 = vmatpush.bf16.msra.mxu3 %v751_v4  ;;  %v927_v5 = vld [vmem:[%s1371_s3 + $0x8] sm:$0xf] }
 0x196   : > { %920 = vmatmul.msk.bf16.vlgmr.msrb.gmra.mxu0 %vm331_vm0, %v546_v7  ;;  %1008 = vpow2.f32 %v455_v8  ;;  %v729_v6 = vsel %vm553_vm2, %v927_v5, 0  ;;  %v924_v7 = vld [vmem:[%s1371_s3 + $0x4] sm:$0xf] }
 0x197   : > { %1010 = vpow2.f32 %v453_v13  ;;  %738 = vmatpush.bf16.msra.mxu2 %v729_v6  ;;  %v689_v8 = vsel %vm553_vm2, %v924_v7, 0 }
 0x198   : > { %1012 = vpow2.f32 %v449_v14  ;;  %698 = vmatpush.bf16.msra.mxu0 %v689_v8 }
 0x199   : > { %1014 = vpow2.f32 %v451_v16 }
 0x19b   : > { %v1007_v9 = vpop.eup %1006 }
 0x19c   : > { %v500_v10 = vsel %vm331_vm0, %v1007_v9, 0.0  ;;  %v547_v11 = vpack.c.bf16 %v1007_v9, %v1007_v9  ;;  %v1009_v12 = vpop.eup %1008  ;;  %v682_v9 = vld [vmem:[%s1371_s3] sm:$0xf] }
 0x19d   : > { %501 = vadd.xlane.f32.xlu2 %v500_v10  ;;  %v1011_v15 = vpop.eup %1010  ;;  %v496_v24 = vmul.f32 %v1009_v12, %v492_v23  ;;  %v708_v10 = vsel %vm553_vm2, %v682_v9, 0 }
 0x19e   : > { %921 = vmatmul.msk.bf16.vlgmr.msrb.gmra.mxu1 %vm331_vm0, %v547_v11  ;;  %v1013_v17 = vpop.eup %1012  ;;  %v495_v20 = vmul.f32 %v1011_v15, %v491_v19 }
 0x19f   : > { %v1015_v18 = vpop.eup %1014  ;;  %v493_v31 = vmul.f32 %v1013_v17, %v489_v28  ;;  %717 = vmatpush.bf16.msra.mxu1 %v708_v10 }
 0x1a0   : > { %v494_v39 = vmul.f32 %v1015_v18, %v490_v35 }
 0x1a4   : > { %539 = vperm.xlu1 %998, %v1009_v12  }
 0x1b5   : > { %534 = vperm.xlu2 %996, %v1011_v15  }
 0x1bd   : > { %524 = vperm.xlu2 %996, %v1013_v17  }
 0x1c5   : > { %529 = vperm.xlu2 %996, %v1015_v18  }
 0x1f6   : > { %v505_v21 = vpop.xlane.xlu2 %504 }
 0x1f7   : > { %v511_v22 = vadd.f32 %v505_v21, %v495_v20 }
 0x1f9   : > { %516 = vst.msk [vmem:[#allocation3 + $0x10] sm:$0xff] %vm322_vm1, %v511_v22 }
 0x1fe   : > { %v508_v25 = vpop.xlane.xlu1 %507 }
 0x1ff   : > { %v512_v26 = vadd.f32 %v508_v25, %v496_v24 }
 0x200   : > { %v644_v27 = vld [vmem:[#allocation3 + $0x10] sm:$0xff] }
 0x201   : > { %517 = vst.msk [vmem:[#allocation3 + $0x18] sm:$0xff] %vm322_vm1, %v512_v26  ;;  %1016 = vrcp.f32 %v644_v27 }
 0x207   : > { %v1017_v29 = vpop.eup %1016  ;;  %v604_v30 = vpop.f32.mrf.mxu2 }
 0x208   : > { %666 = vperm.xlu0 %997, %v1017_v29   ;;  %v499_v32 = vpop.xlane.xlu0 %498  ;;  %v645_v33 = vld [vmem:[#allocation3 + $0x18] sm:$0xff] }
 0x209   : > { %v509_v34 = vadd.f32 %v499_v32, %v493_v31  ;;  %1018 = vrcp.f32 %v645_v33 }
 0x20b   : > { %514 = vst.msk [vmem:[#allocation3] sm:$0xff] %vm322_vm1, %v509_v34 }
 0x20f   : > { %v1019_v36 = vpop.eup %1018  ;;  %v606_v37 = vpop.f32.mrf.mxu2 }
 0x210   : > { %v623_v38 = vpop.f32.mrf.mxu3  ;;  %v502_v40 = vpop.xlane.xlu2 %501  ;;  %671 = vperm.xlu2 %996, %v1019_v36   ;;  %v999_v36 = vld [vmem:[%s1372_s4] ss:$0 sm:$0xff] }
 0x211   : > { %v510_v41 = vadd.f32 %v502_v40, %v494_v39 }
 0x212   : > { %v642_v42 = vld [vmem:[#allocation3] sm:$0xff] }
 0x213   : > { %515 = vst.msk [vmem:[#allocation3 + $0x8] sm:$0xff] %vm322_vm1, %v510_v41  ;;  %v566_v43 = vpop.f32.mrf.mxu0  ;;  %1020 = vrcp.f32 %v642_v42 }
 0x216   : > { %v540_v45 = vpop.permute.xlu1 %539 }
 0x217   : > { %v545_v47 = vmul.f32 %v540_v45, %v521_v44 }
 0x218   : > { %v625_v48 = vpop.f32.mrf.mxu3  ;;  %v535_v49 = vpop.permute.xlu2 %534 }
 0x219   : > { %v1021_v50 = vpop.eup %1020  ;;  %v630_v51 = vadd.f32 %v623_v38, %v545_v47  ;;  %v544_v52 = vmul.f32 %v535_v49, %v520_v46 }
 0x21a   : > { %656 = vperm.xlu1 %998, %v1021_v50   ;;  %v643_v53 = vld [vmem:[#allocation3 + $0x8] sm:$0xff] }
 0x21b   : > { %634 = vst.msk [vmem:[#allocation4 + $0x18] sm:$0xff] %vm331_vm0, %v630_v51  ;;  %v629_v54 = vadd.f32 %v604_v30, %v544_v52  ;;  %v568_v55 = vpop.f32.mrf.mxu0  ;;  %v585_v56 = vpop.f32.mrf.mxu1  ;;  %1022 = vrcp.f32 %v643_v53 }
 0x21d   : > { %633 = vst.msk [vmem:[#allocation4 + $0x10] sm:$0xff] %vm331_vm0, %v629_v54 }
 0x220   : > { %v525_v58 = vpop.permute.xlu2 %524 }
 0x221   : > { %v1023_v59 = vpop.eup %1022  ;;  %v542_v60 = vmul.f32 %v525_v58, %v518_v57 }
 0x222   : > { %661 = vperm.xlu2 %996, %v1023_v59   ;;  %v653_v11 = vld [vmem:[#allocation4 + $0x18] sm:$0xff] }
 0x223   : > { %v627_v61 = vadd.f32 %v566_v43, %v542_v60  ;;  %v587_v62 = vpop.f32.mrf.mxu1 }
 0x224   : > { %v652_v16 = vld [vmem:[#allocation4 + $0x10] sm:$0xff] }
 0x225   : > { %631 = vst.msk [vmem:[#allocation4] sm:$0xff] %vm331_vm0, %v627_v61 }
 0x228   : > { %v530_v0 = vpop.permute.xlu2 %529 }
 0x229   : > { %v543_v1 = vmul.f32 %v530_v0, %v519_v63 }
 0x22b   : > { %v628_v2 = vadd.f32 %v585_v56, %v543_v1 }
 0x22c   : > { %v650_v24 = vld [vmem:[#allocation4] sm:$0xff] }
 0x22d   : > { %632 = vst.msk [vmem:[#allocation4 + $0x8] sm:$0xff] %vm331_vm0, %v628_v2 }
 0x234   : > { %v651_v18 = vld [vmem:[#allocation4 + $0x8] sm:$0xff] }
 0x26a   : > { %v672_v12 = vpop.permute.xlu2 %671 }
 0x26b   : > { %v677_v13 = vmul.f32 %v672_v12, %v653_v11 }
 0x26d   : > { %v681_v14 = vpack.c.bf16 %v677_v13, %v677_v13 }
 0x26f   : > { %930 = vmatmul.msk.bf16.vlgmr.msra.gmra.mxu3 %vm331_vm0, %v681_v14 }
 0x27a   : > { %v667_v15 = vpop.permute.xlu0 %666 }
 0x27b   : > { %v676_v17 = vmul.f32 %v667_v15, %v652_v16 }
 0x27c   : > { %v662_v19 = vpop.permute.xlu2 %661 }
 0x27d   : > { %v680_v20 = vpack.c.bf16 %v676_v17, %v676_v17  ;;  %v675_v21 = vmul.f32 %v662_v19, %v651_v18 }
 0x27f   : > { %v679_v22 = vpack.c.bf16 %v675_v21, %v675_v21  ;;  %928 = vmatmul.msk.bf16.vlgmr.msra.gmra.mxu2 %vm331_vm0, %v680_v20 }
 0x281   : > { %925 = vmatmul.msk.bf16.vlgmr.msra.gmra.mxu0 %vm331_vm0, %v679_v22 }
 0x28c   : > { %v657_v23 = vpop.permute.xlu1 %656 }
 0x28d   : > { %v674_v25 = vmul.f32 %v657_v23, %v650_v24 }
 0x28f   : > { %v678_v26 = vpack.c.bf16 %v674_v25, %v674_v25 }
 0x291   : > { %926 = vmatmul.msk.bf16.vlgmr.msra.gmra.mxu1 %vm331_vm0, %v678_v26 }
 0x2f2   : > { %v762_v27 = vpop.f32.mrf.mxu3 }
 0x2fa   : > { %v764_v28 = vpop.f32.mrf.mxu3 }
 0x2fe   : > { %v700_v29 = vpop.f32.mrf.mxu0 }
 0x302   : > { %v740_v30 = vpop.f32.mrf.mxu2 }
 0x306   : > { %v702_v31 = vpop.f32.mrf.mxu0 }
 0x30a   : > { %v742_v32 = vpop.f32.mrf.mxu2 }
 0x30e   : > { %v719_v33 = vpop.f32.mrf.mxu1 }
 0x30f   : > { %v720_v34 = vadd.f32 %v719_v33, %v700_v29 }
 0x311   : > { %v744_v35 = vadd.f32 %v740_v30, %v720_v34 }
 0x313   : > { %v766_v37 = vadd.f32 %v762_v27, %v744_v35 }
 0x315   : > { %v771_v38 = vadd.f32 %v999_v36, %v766_v37 }
 0x316   : > { %v721_v39 = vpop.f32.mrf.mxu1 }
 0x317   : > { %773 = vst.msk [vmem:[%s292_s25] sm:$0xff] %vm772_vm3, %v771_v38 }
 0x318   : > { %1051 = shalt.err (!%p1048_p5)
}
 0x319   : > { %938 = dma.vmem_to_hbm [thread:$0]  (%p1177_p4), %s789_s27, 128, %s791_s29, %s775_s21  }
 0x31a PF: > { %p944_p6 = scmp.ge.s32.totalorder %s1102_s23, 2  ;;  %s802_s11 = sand.u32 1, %s1082_s18  }
 0x31b   : > { %s803_s15 = scalar_lea.sflag [#allocation6], %s802_s11 }
 0x31c   : > { %p941_p7 = pnand %p944_p6, %p1184_p8 }
 0x31e   : > { %p942_p9 = pneg %p941_p7 }
 0x320   : > { %1077 = dma.done.wait (%p942_p9), %s803_s15, 128  }
 0x321   : > { %1079 = vsyncadd (%p942_p9), %s803_s15, 4294967168  ;;  %s18_s23 = sadd.s32 1, %s1102_s23   ;;  %s1376_s18 = smov %s1086_s19 }
 0x322   : > { %p15_p10 = scmp.ge.s32.totalorder %s18_s23, 4   ;;  %s1377_s19 = smov %s1090_s20 }
 0x323   : > { %s1378_s20 = smov %s1190_s6  ;;  %s1379_s21 = smov %s1098_s22 }
 0x324   : > { %s1380_s22 = smov %s1382_s26  ;;  %17 = sbr.rel (!%p15_p10) target bundleno = 4 (0x4), region = 92 }
 0x329   :  { %809 = vsyncpa [#allocation6], 1 }
 0x32a   :  { %811 = vsyncpa [#allocation6 + $0x1], 1 }

</bundles_post_ra>
